<compile_context>
chip_gen: v6e
topology: v6e:2x2x1
jax: 0.10.0
libtpu: 0.0.40
codegen_flags: <defaults>
</compile_context>

<pallas_src>
import functools

import jax
import jax.numpy as jnp
from jax.experimental import pallas as pl
from jax.experimental.pallas import tpu as pltpu

LANE = 128


def _round_up(a, b):
    return (a + b - 1) // b * b


def _pad2(a, rows, cols):
    return jnp.zeros((rows, cols), a.dtype).at[: a.shape[0], : a.shape[1]].set(a)


def _layer1_kernel(a_ref, xk_ref, xi_ref, wr_ref, ws_ref, b_ref, h_ref, acc_ref,
                   *, tile, resident):
    """Accumulate A@x over K tiles; at the last K step apply the fused
    GraphConv epilogue  h = relu(agg @ W_rel + x @ W_root + b)."""
    k = pl.program_id(1)

    if resident:  # xk_ref holds the full padded x; slice the K chunk in VMEM.
        start = pl.multiple_of(k * tile, tile)
        xk = xk_ref[pl.ds(start, tile), :]
    else:
        xk = xk_ref[...]

    part = jnp.dot(a_ref[...], xk, preferred_element_type=jnp.float32)

    @pl.when(k == 0)
    def _():
        acc_ref[...] = part            # direct store: no zero-fill + RMW

    @pl.when(k != 0)
    def _():
        acc_ref[...] += part

    @pl.when(k == pl.num_programs(1) - 1)
    def _():
        agg = acc_ref[...].astype(jnp.bfloat16)                    # [tile, cpad]
        h = (
            jnp.dot(agg, wr_ref[...], preferred_element_type=jnp.float32)
            + jnp.dot(xi_ref[...], ws_ref[...], preferred_element_type=jnp.float32)
            + b_ref[...]
        )
        # NOTE: padded node rows become relu(b); they are excluded downstream
        # because both A's and the pooling matrix's padded columns are zero.
        h_ref[...] = jnp.maximum(h, 0.0).astype(h_ref.dtype)


def _layer2_kernel(a_ref, hk_ref, hi_ref, wr_ref, ws_ref, b_ref, p_ref, wl_ref,
                   out_ref, acc_ref, *, tile, resident):
    """Per row tile: h2 = agg @ W2_rel + h1 @ W2_root + b2, then emit the
    per-tile partial logits (P_tile @ h2) @ W_lin (summed in the wrapper)."""
    k = pl.program_id(1)

    if resident:
        start = pl.multiple_of(k * tile, tile)
        hk = hk_ref[pl.ds(start, tile), :]
    else:
        hk = hk_ref[...]

    part = jnp.dot(a_ref[...], hk, preferred_element_type=jnp.float32)

    @pl.when(k == 0)
    def _():
        acc_ref[...] = part

    @pl.when(k != 0)
    def _():
        acc_ref[...] += part

    @pl.when(k == pl.num_programs(1) - 1)
    def _():
        agg = acc_ref[...].astype(jnp.bfloat16)                    # [tile, hpad]
        h2 = (
            jnp.dot(agg, wr_ref[...], preferred_element_type=jnp.float32)
            + jnp.dot(hi_ref[...], ws_ref[...], preferred_element_type=jnp.float32)
            + b_ref[...]
        )                                                          # [tile, hpad]
        pooled = jnp.dot(
            p_ref[...], h2.astype(jnp.bfloat16),
            preferred_element_type=jnp.float32,
        )                                                          # [gpad, hpad]
        out_ref[...] = jnp.dot(
            pooled.astype(jnp.bfloat16), wl_ref[...],
            preferred_element_type=jnp.float32,
        )                                                          # [gpad, opad]


@functools.partial(jax.jit, static_argnames=("num_graphs",))
def graph_conv_net_pallas(x, edge_index, batch, params, *, num_graphs):
    """x: [N, Cin] f32, edge_index: [2, E] int32, batch: [N] int32."""
    n, cin = x.shape
    (w1_rel, b1_rel, w1_root, w2_rel, b2_rel, w2_root, w_lin, b_lin) = params
    hid = w1_rel.shape[1]
    out_c = w_lin.shape[1]

    cpad = _round_up(cin, LANE)
    hpad = _round_up(hid, LANE)
    opad = _round_up(out_c, LANE)
    gpad = _round_up(max(num_graphs, 8), 8)

    # --- tile selection: largest tile that doesn't inflate padded N > ~12.5% ---
    npad128 = _round_up(n, LANE)
    tile = LANE
    for cand in (256, 512, 1024):
        if n >= cand and _round_up(n, cand) - npad128 <= npad128 // 8:
            tile = cand
    npad = _round_up(n, tile)
    nt = npad // tile

    # Keep the neighbour operand (padded x / h1, [npad, 128] bf16) fully VMEM
    # resident when small; fall back to K-streaming blocks for huge graphs.
    resident = npad * max(cpad, hpad) * 2 <= 8 * 1024 * 1024

    # ---- dense operators built in the wrapper (bf16, no f32 build + cast) ----
    src, dst = edge_index[0], edge_index[1]
    # bf16 counts are exact for per-(dst,src) multiplicities <= 256.
    adj = (
        jnp.zeros((npad, npad), jnp.bfloat16)
        .at[dst, src].add(jnp.ones_like(src, dtype=jnp.bfloat16))
    )
    x_p = _pad2(x, npad, cpad).astype(jnp.bfloat16)

    onehot = jax.nn.one_hot(batch, num_graphs, dtype=jnp.float32)     # [n, G]
    counts = jnp.maximum(onehot.sum(axis=0), 1.0)
    pool = (onehot / counts[None, :]).T                               # [G, n]
    pool_p = _pad2(pool, gpad, npad).astype(jnp.bfloat16)

    # Lane-padded weights / biases (biases stay f32).
    w1r_p = _pad2(w1_rel, cpad, hpad).astype(jnp.bfloat16)
    w1s_p = _pad2(w1_root, cpad, hpad).astype(jnp.bfloat16)
    b1_p = _pad2(b1_rel, 1, hpad)
    w2r_p = _pad2(w2_rel, hpad, hpad).astype(jnp.bfloat16)
    w2s_p = _pad2(w2_root, hpad, hpad).astype(jnp.bfloat16)
    b2_p = _pad2(b2_rel, 1, hpad)
    wl_p = _pad2(w_lin, hpad, opad).astype(jnp.bfloat16)
    bl_p = _pad2(b_lin, 1, opad)

    cparams = pltpu.CompilerParams(
        dimension_semantics=("parallel", "arbitrary"),
        vmem_limit_bytes=32 * 1024 * 1024,
    )

    xk_spec = (
        pl.BlockSpec((npad, cpad), lambda i, k: (0, 0)) if resident
        else pl.BlockSpec((tile, cpad), lambda i, k: (k, 0))
    )

    # ---- layer 1: h1 = relu(GraphConv1(x)) ----
    h1 = pl.pallas_call(
        functools.partial(_layer1_kernel, tile=tile, resident=resident),
        out_shape=jax.ShapeDtypeStruct((npad, hpad), jnp.bfloat16),
        grid_spec=pltpu.PrefetchScalarGridSpec(
            num_scalar_prefetch=0,
            grid=(nt, nt),
            in_specs=[
                pl.BlockSpec((tile, tile), lambda i, k: (i, k)),     # A tile
                xk_spec,                                             # x (neighbours)
                pl.BlockSpec((tile, cpad), lambda i, k: (i, 0)),     # x (root rows)
                pl.BlockSpec((cpad, hpad), lambda i, k: (0, 0)),     # W1_rel
                pl.BlockSpec((cpad, hpad), lambda i, k: (0, 0)),     # W1_root
                pl.BlockSpec((1, hpad), lambda i, k: (0, 0)),        # b1
            ],
            out_specs=pl.BlockSpec((tile, hpad), lambda i, k: (i, 0)),
            scratch_shapes=[pltpu.VMEM((tile, cpad), jnp.float32)],
        ),
        compiler_params=cparams,
    )(adj, x_p, x_p, w1r_p, w1s_p, b1_p)

    hk_spec = (
        pl.BlockSpec((npad, hpad), lambda i, k: (0, 0)) if resident
        else pl.BlockSpec((tile, hpad), lambda i, k: (k, 0))
    )

    # ---- layer 2 + global mean pool + classifier (per row tile) ----
    out_part = pl.pallas_call(
        functools.partial(_layer2_kernel, tile=tile, resident=resident),
        out_shape=jax.ShapeDtypeStruct((nt, gpad, opad), jnp.float32),
        grid_spec=pltpu.PrefetchScalarGridSpec(
            num_scalar_prefetch=0,
            grid=(nt, nt),
            in_specs=[
                pl.BlockSpec((tile, tile), lambda i, k: (i, k)),     # A tile
                hk_spec,                                             # h1 (neighbours)
                pl.BlockSpec((tile, hpad), lambda i, k: (i, 0)),     # h1 (root rows)
                pl.BlockSpec((hpad, hpad), lambda i, k: (0, 0)),     # W2_rel
                pl.BlockSpec((hpad, hpad), lambda i, k: (0, 0)),     # W2_root
                pl.BlockSpec((1, hpad), lambda i, k: (0, 0)),        # b2
                pl.BlockSpec((gpad, tile), lambda i, k: (0, i)),     # mean-pool tile
                pl.BlockSpec((hpad, opad), lambda i, k: (0, 0)),     # W_lin
            ],
            out_specs=pl.BlockSpec((None, gpad, opad), lambda i, k: (i, 0, 0)),
            scratch_shapes=[pltpu.VMEM((tile, hpad), jnp.float32)],
        ),
        compiler_params=cparams,
    )(adj, h1, h1, w2r_p, w2s_p, b2_p, pool_p, wl_p)

    # Tiny epilogue kept in XLA so the row-tile axis stays megacore-parallel.
    logits = out_part.sum(axis=0) + bl_p
    return logits[:num_graphs, :out_c]


def _reference(x, adj, pool, params, use_bf16):
    """Plain-JAX reference; use_bf16=True mirrors the kernel's MXU casts."""
    (w1r, b1, w1s, w2r, b2, w2s, wl, bl) = params
    if use_bf16:
        def mm(a, b):
            return jnp.dot(a.astype(jnp.bfloat16), b.astype(jnp.bfloat16),
                           preferred_element_type=jnp.float32)
        cast = lambda t: t.astype(jnp.bfloat16).astype(jnp.float32)
    else:
        def mm(a, b):
            return jnp.dot(a, b, preferred_element_type=jnp.float32)
        cast = lambda t: t
    h1 = cast(jnp.maximum(mm(mm(adj, x), w1r) + b1 + mm(x, w1s), 0.0))
    h2 = mm(mm(adj, h1), w2r) + b2 + mm(h1, w2s)
    pooled = mm(pool, h2)
    return mm(pooled, wl) + bl


if __name__ == "__main__":
    # Small shapes consistent with the module.
    N, E = 16, 40            # nodes, edges
    IN_C, HID, OUT_C = 4, 32, 3
    G = 2                    # number of graphs in the batch

    key = jax.random.PRNGKey(0)
    ks = jax.random.split(key, 10)

    x = jax.random.normal(ks[0], (N, IN_C), jnp.float32)
    edge_index = jax.random.randint(ks[1], (2, E), 0, N, jnp.int32)
    batch = jnp.concatenate([jnp.zeros(N // 2, jnp.int32),
                             jnp.ones(N - N // 2, jnp.int32)])

    def uinit(k, shape, fan_in):
        bound = 1.0 / jnp.sqrt(float(fan_in))
        return jax.random.uniform(k, shape, jnp.float32, -bound, bound)

    # Weights stored as [in, out] (PyTorch weight transposed); biases as [1, out].
    params = (
        uinit(ks[2], (IN_C, HID), IN_C),    # conv1.lin_rel.weight^T
        uinit(ks[3], (1, HID), IN_C),       # conv1.lin_rel.bias
        uinit(ks[4], (IN_C, HID), IN_C),    # conv1.lin_root.weight^T (no bias)
        uinit(ks[5], (HID, HID), HID),      # conv2.lin_rel.weight^T
        uinit(ks[6], (1, HID), HID),        # conv2.lin_rel.bias
        uinit(ks[7], (HID, HID), HID),      # conv2.lin_root.weight^T (no bias)
        uinit(ks[8], (HID, OUT_C), HID),    # linear.weight^T
        uinit(ks[9], (1, OUT_C), HID),      # linear.bias
    )

    out = graph_conv_net_pallas(x, edge_index, batch, params, num_graphs=G)
    out = jax.block_until_ready(out)
    assert out.shape == (G, OUT_C)

    # References (un-padded; padding contributes exact zeros).
    src, dst = edge_index[0], edge_index[1]
    adj = jnp.zeros((N, N), jnp.float32).at[dst, src].add(1.0)
    onehot = jax.nn.one_hot(batch, G, dtype=jnp.float32)
    pool = (onehot / jnp.maximum(onehot.sum(0), 1.0)[None, :]).T

    ref_bf16 = _reference(x, adj, pool, params, use_bf16=True)    # mirrors kernel casts
    ref_f32 = _reference(x, adj, pool, params, use_bf16=False)    # module semantics

    assert jnp.allclose(out, ref_bf16, atol=5e-3, rtol=5e-3), "mismatch vs bf16 reference"
    assert jnp.allclose(out, ref_f32, atol=1e-1), "mismatch vs f32 reference"

    print("KERNEL_OK")
</pallas_src>

<mosaic_0001>
module attributes {stable_mosaic.version = 11 : i64} {
  func.func @_layer1_kernel(%arg0: i32, %arg1: i32, %arg2: memref<128x128xbf16, #tpu.memory_space<vmem>>, %arg3: memref<128x128xbf16, #tpu.memory_space<vmem>>, %arg4: memref<128x128xbf16, #tpu.memory_space<vmem>>, %arg5: memref<128x128xbf16, #tpu.memory_space<vmem>>, %arg6: memref<128x128xbf16, #tpu.memory_space<vmem>>, %arg7: memref<1x128xf32, #tpu.memory_space<vmem>>, %arg8: memref<128x128xbf16, #tpu.memory_space<vmem>>, %arg9: memref<128x128xf32, #tpu.memory_space<vmem>>) attributes {dimension_semantics = [#tpu.dimension_semantics<parallel>, #tpu.dimension_semantics<arbitrary>], iteration_bounds = array<i64: 1, 1>, scalar_prefetch = 0 : i64, scratch_operands = 1 : i64, tpu.core_type = #tpu.core_type<tc>, window_params = [{transform_indices = @transform_0, window_bounds = array<i64: 128, 128>}, {pipeline_mode = #tpu.pipeline_mode<synchronous>, transform_indices = @transform_1, window_bounds = array<i64: 128, 128>}, {transform_indices = @transform_2, window_bounds = array<i64: 128, 128>}, {pipeline_mode = #tpu.pipeline_mode<synchronous>, transform_indices = @transform_3, window_bounds = array<i64: 128, 128>}, {pipeline_mode = #tpu.pipeline_mode<synchronous>, transform_indices = @transform_4, window_bounds = array<i64: 128, 128>}, {pipeline_mode = #tpu.pipeline_mode<synchronous>, transform_indices = @transform_5, window_bounds = array<i64: 1, 128>}, {transform_indices = @transform_6, window_bounds = array<i64: 128, 128>}]} {
    %c128_i32 = arith.constant 128 : i32
    %0 = arith.muli %arg1, %c128_i32 : i32
    %1 = tpu.assume_multiple %0, 128 : i32
    %2 = arith.index_cast %1 : i32 to index
    %c0 = arith.constant 0 : index
    %3 = vector.load %arg3[%2, %c0] : memref<128x128xbf16, #tpu.memory_space<vmem>>, vector<128x128xbf16>
    %c0_0 = arith.constant 0 : index
    %c0_1 = arith.constant 0 : index
    %4 = vector.load %arg2[%c0_0, %c0_1] : memref<128x128xbf16, #tpu.memory_space<vmem>>, vector<128x128xbf16>
    %cst = arith.constant dense<0.000000e+00> : vector<128x128xf32>
    %5 = tpu.matmul %4, %3, %cst {dimension_numbers = #tpu.dot_dimension_numbers<[1], [0], [0], [1], [0, 0, 1, 1], [], []>} : vector<128x128xbf16>, vector<128x128xbf16>, vector<128x128xf32> -> vector<128x128xf32>
    %c0_i32 = arith.constant 0 : i32
    %6 = arith.cmpi eq, %arg1, %c0_i32 : i32
    %7 = arith.extui %6 : i1 to i32
    %c0_i32_2 = arith.constant 0 : i32
    %8 = arith.cmpi ne, %7, %c0_i32_2 : i32
    scf.if %8 {
      %c0_7 = arith.constant 0 : index
      %c0_8 = arith.constant 0 : index
      %15 = vector.load %arg9[%c0_7, %c0_8] : memref<128x128xf32, #tpu.memory_space<vmem>>, vector<128x128xf32>
      tpu.vector_store %arg9[%c0_7, %c0_8], %5 {strides = array<i32>} : memref<128x128xf32, #tpu.memory_space<vmem>>, vector<128x128xf32>,
    } else {
    }
    %c0_i32_3 = arith.constant 0 : i32
    %9 = arith.cmpi ne, %arg1, %c0_i32_3 : i32
    %10 = arith.extui %9 : i1 to i32
    %c0_i32_4 = arith.constant 0 : i32
    %11 = arith.cmpi ne, %10, %c0_i32_4 : i32
    scf.if %11 {
      %c0_7 = arith.constant 0 : index
      %c0_8 = arith.constant 0 : index
      %15 = vector.load %arg9[%c0_7, %c0_8] : memref<128x128xf32, #tpu.memory_space<vmem>>, vector<128x128xf32>
      %16 = arith.addf %15, %5 : vector<128x128xf32>
      %c0_9 = arith.constant 0 : index
      %c0_10 = arith.constant 0 : index
      %17 = vector.load %arg9[%c0_9, %c0_10] : memref<128x128xf32, #tpu.memory_space<vmem>>, vector<128x128xf32>
      tpu.vector_store %arg9[%c0_9, %c0_10], %16 {strides = array<i32>} : memref<128x128xf32, #tpu.memory_space<vmem>>, vector<128x128xf32>,
    } else {
    }
    %c0_i32_5 = arith.constant 0 : i32
    %12 = arith.cmpi eq, %arg1, %c0_i32_5 : i32
    %13 = arith.extui %12 : i1 to i32
    %c0_i32_6 = arith.constant 0 : i32
    %14 = arith.cmpi ne, %13, %c0_i32_6 : i32
    scf.if %14 {
      %c0_7 = arith.constant 0 : index
      %c0_8 = arith.constant 0 : index
      %15 = vector.load %arg9[%c0_7, %c0_8] : memref<128x128xf32, #tpu.memory_space<vmem>>, vector<128x128xf32>
      %16 = arith.truncf %15 : vector<128x128xf32> to vector<128x128xbf16>
      %c0_9 = arith.constant 0 : index
      %c0_10 = arith.constant 0 : index
      %17 = vector.load %arg5[%c0_9, %c0_10] : memref<128x128xbf16, #tpu.memory_space<vmem>>, vector<128x128xbf16>
      %cst_11 = arith.constant dense<0.000000e+00> : vector<128x128xf32>
      %18 = tpu.matmul %16, %17, %cst_11 {dimension_numbers = #tpu.dot_dimension_numbers<[1], [0], [0], [1], [0, 0, 1, 1], [], []>} : vector<128x128xbf16>, vector<128x128xbf16>, vector<128x128xf32> -> vector<128x128xf32>
      %c0_12 = arith.constant 0 : index
      %c0_13 = arith.constant 0 : index
      %19 = vector.load %arg4[%c0_12, %c0_13] : memref<128x128xbf16, #tpu.memory_space<vmem>>, vector<128x128xbf16>
      %c0_14 = arith.constant 0 : index
      %c0_15 = arith.constant 0 : index
      %20 = vector.load %arg6[%c0_14, %c0_15] : memref<128x128xbf16, #tpu.memory_space<vmem>>, vector<128x128xbf16>
      %cst_16 = arith.constant dense<0.000000e+00> : vector<128x128xf32>
      %21 = tpu.matmul %19, %20, %cst_16 {dimension_numbers = #tpu.dot_dimension_numbers<[1], [0], [0], [1], [0, 0, 1, 1], [], []>} : vector<128x128xbf16>, vector<128x128xbf16>, vector<128x128xf32> -> vector<128x128xf32>
      %22 = arith.addf %18, %21 : vector<128x128xf32>
      %c0_17 = arith.constant 0 : index
      %c0_18 = arith.constant 0 : index
      %23 = vector.load %arg7[%c0_17, %c0_18] : memref<1x128xf32, #tpu.memory_space<vmem>>, vector<1x128xf32>
      %24 = vector.broadcast %23 : vector<1x128xf32> to vector<128x128xf32>
      %25 = arith.addf %22, %24 : vector<128x128xf32>
      %cst_19 = arith.constant 0.000000e+00 : f32
      %26 = vector.broadcast %cst_19 : f32 to vector<128x128xf32>
      %27 = arith.maximumf %25, %26 : vector<128x128xf32>
      %28 = arith.truncf %27 : vector<128x128xf32> to vector<128x128xbf16>
      %c0_20 = arith.constant 0 : index
      %c0_21 = arith.constant 0 : index
      %29 = vector.load %arg8[%c0_20, %c0_21] : memref<128x128xbf16, #tpu.memory_space<vmem>>, vector<128x128xbf16>
      tpu.vector_store %arg8[%c0_20, %c0_21], %28 {strides = array<i32>} : memref<128x128xbf16, #tpu.memory_space<vmem>>, vector<128x128xbf16>,
    } else {
    }
    return
  }
  func.func @transform_0(%arg0: i32, %arg1: i32) -> (i32, i32) {
    %c0_i32 = arith.constant 0 : i32
    return %arg0, %arg1 : i32, i32
  }
  func.func @transform_1(%arg0: i32, %arg1: i32) -> (i32, i32) {
    %c0_i32 = arith.constant 0 : i32
    %c0_i32_0 = arith.constant 0 : i32
    %c0_i32_1 = arith.constant 0 : i32
    return %c0_i32, %c0_i32_0 : i32, i32
  }
  func.func @transform_2(%arg0: i32, %arg1: i32) -> (i32, i32) {
    %c0_i32 = arith.constant 0 : i32
    %c0_i32_0 = arith.constant 0 : i32
    return %arg0, %c0_i32 : i32, i32
  }
  func.func @transform_3(%arg0: i32, %arg1: i32) -> (i32, i32) {
    %c0_i32 = arith.constant 0 : i32
    %c0_i32_0 = arith.constant 0 : i32
    %c0_i32_1 = arith.constant 0 : i32
    return %c0_i32, %c0_i32_0 : i32, i32
  }
  func.func @transform_4(%arg0: i32, %arg1: i32) -> (i32, i32) {
    %c0_i32 = arith.constant 0 : i32
    %c0_i32_0 = arith.constant 0 : i32
    %c0_i32_1 = arith.constant 0 : i32
    return %c0_i32, %c0_i32_0 : i32, i32
  }
  func.func @transform_5(%arg0: i32, %arg1: i32) -> (i32, i32) {
    %c0_i32 = arith.constant 0 : i32
    %c0_i32_0 = arith.constant 0 : i32
    %c0_i32_1 = arith.constant 0 : i32
    return %c0_i32, %c0_i32_0 : i32, i32
  }
  func.func @transform_6(%arg0: i32, %arg1: i32) -> (i32, i32) {
    %c0_i32 = arith.constant 0 : i32
    %c0_i32_0 = arith.constant 0 : i32
    return %arg0, %c0_i32 : i32, i32
  }
}

module attributes {stable_mosaic.version = 11 : i64} {
  func.func @_layer2_kernel(%arg0: i32, %arg1: i32, %arg2: memref<128x128xbf16, #tpu.memory_space<vmem>>, %arg3: memref<128x128xbf16, #tpu.memory_space<vmem>>, %arg4: memref<128x128xbf16, #tpu.memory_space<vmem>>, %arg5: memref<128x128xbf16, #tpu.memory_space<vmem>>, %arg6: memref<128x128xbf16, #tpu.memory_space<vmem>>, %arg7: memref<1x128xf32, #tpu.memory_space<vmem>>, %arg8: memref<8x128xbf16, #tpu.memory_space<vmem>>, %arg9: memref<128x128xbf16, #tpu.memory_space<vmem>>, %arg10: memref<1x8x128xf32, #tpu.memory_space<vmem>>, %arg11: memref<128x128xf32, #tpu.memory_space<vmem>>) attributes {dimension_semantics = [#tpu.dimension_semantics<parallel>, #tpu.dimension_semantics<arbitrary>], iteration_bounds = array<i64: 1, 1>, scalar_prefetch = 0 : i64, scratch_operands = 1 : i64, tpu.core_type = #tpu.core_type<tc>, window_params = [{transform_indices = @transform_0, window_bounds = array<i64: 128, 128>}, {pipeline_mode = #tpu.pipeline_mode<synchronous>, transform_indices = @transform_1, window_bounds = array<i64: 128, 128>}, {transform_indices = @transform_2, window_bounds = array<i64: 128, 128>}, {pipeline_mode = #tpu.pipeline_mode<synchronous>, transform_indices = @transform_3, window_bounds = array<i64: 128, 128>}, {pipeline_mode = #tpu.pipeline_mode<synchronous>, transform_indices = @transform_4, window_bounds = array<i64: 128, 128>}, {pipeline_mode = #tpu.pipeline_mode<synchronous>, transform_indices = @transform_5, window_bounds = array<i64: 1, 128>}, {transform_indices = @transform_6, window_bounds = array<i64: 8, 128>}, {pipeline_mode = #tpu.pipeline_mode<synchronous>, transform_indices = @transform_7, window_bounds = array<i64: 128, 128>}, {transform_indices = @transform_8, window_bounds = array<i64: 1, 8, 128>}]} {
    %c128_i32 = arith.constant 128 : i32
    %0 = arith.muli %arg1, %c128_i32 : i32
    %1 = tpu.assume_multiple %0, 128 : i32
    %2 = arith.index_cast %1 : i32 to index
    %c0 = arith.constant 0 : index
    %3 = vector.load %arg3[%2, %c0] : memref<128x128xbf16, #tpu.memory_space<vmem>>, vector<128x128xbf16>
    %c0_0 = arith.constant 0 : index
    %c0_1 = arith.constant 0 : index
    %4 = vector.load %arg2[%c0_0, %c0_1] : memref<128x128xbf16, #tpu.memory_space<vmem>>, vector<128x128xbf16>
    %cst = arith.constant dense<0.000000e+00> : vector<128x128xf32>
    %5 = tpu.matmul %4, %3, %cst {dimension_numbers = #tpu.dot_dimension_numbers<[1], [0], [0], [1], [0, 0, 1, 1], [], []>} : vector<128x128xbf16>, vector<128x128xbf16>, vector<128x128xf32> -> vector<128x128xf32>
    %c0_i32 = arith.constant 0 : i32
    %6 = arith.cmpi eq, %arg1, %c0_i32 : i32
    %7 = arith.extui %6 : i1 to i32
    %c0_i32_2 = arith.constant 0 : i32
    %8 = arith.cmpi ne, %7, %c0_i32_2 : i32
    scf.if %8 {
      %c0_7 = arith.constant 0 : index
      %c0_8 = arith.constant 0 : index
      %15 = vector.load %arg11[%c0_7, %c0_8] : memref<128x128xf32, #tpu.memory_space<vmem>>, vector<128x128xf32>
      tpu.vector_store %arg11[%c0_7, %c0_8], %5 {strides = array<i32>} : memref<128x128xf32, #tpu.memory_space<vmem>>, vector<128x128xf32>,
    } else {
    }
    %c0_i32_3 = arith.constant 0 : i32
    %9 = arith.cmpi ne, %arg1, %c0_i32_3 : i32
    %10 = arith.extui %9 : i1 to i32
    %c0_i32_4 = arith.constant 0 : i32
    %11 = arith.cmpi ne, %10, %c0_i32_4 : i32
    scf.if %11 {
      %c0_7 = arith.constant 0 : index
      %c0_8 = arith.constant 0 : index
      %15 = vector.load %arg11[%c0_7, %c0_8] : memref<128x128xf32, #tpu.memory_space<vmem>>, vector<128x128xf32>
      %16 = arith.addf %15, %5 : vector<128x128xf32>
      %c0_9 = arith.constant 0 : index
      %c0_10 = arith.constant 0 : index
      %17 = vector.load %arg11[%c0_9, %c0_10] : memref<128x128xf32, #tpu.memory_space<vmem>>, vector<128x128xf32>
      tpu.vector_store %arg11[%c0_9, %c0_10], %16 {strides = array<i32>} : memref<128x128xf32, #tpu.memory_space<vmem>>, vector<128x128xf32>,
    } else {
    }
    %c0_i32_5 = arith.constant 0 : i32
    %12 = arith.cmpi eq, %arg1, %c0_i32_5 : i32
    %13 = arith.extui %12 : i1 to i32
    %c0_i32_6 = arith.constant 0 : i32
    %14 = arith.cmpi ne, %13, %c0_i32_6 : i32
    scf.if %14 {
      %c0_7 = arith.constant 0 : index
      %c0_8 = arith.constant 0 : index
      %15 = vector.load %arg11[%c0_7, %c0_8] : memref<128x128xf32, #tpu.memory_space<vmem>>, vector<128x128xf32>
      %16 = arith.truncf %15 : vector<128x128xf32> to vector<128x128xbf16>
      %c0_9 = arith.constant 0 : index
      %c0_10 = arith.constant 0 : index
      %17 = vector.load %arg5[%c0_9, %c0_10] : memref<128x128xbf16, #tpu.memory_space<vmem>>, vector<128x128xbf16>
      %cst_11 = arith.constant dense<0.000000e+00> : vector<128x128xf32>
      %18 = tpu.matmul %16, %17, %cst_11 {dimension_numbers = #tpu.dot_dimension_numbers<[1], [0], [0], [1], [0, 0, 1, 1], [], []>} : vector<128x128xbf16>, vector<128x128xbf16>, vector<128x128xf32> -> vector<128x128xf32>
      %c0_12 = arith.constant 0 : index
      %c0_13 = arith.constant 0 : index
      %19 = vector.load %arg4[%c0_12, %c0_13] : memref<128x128xbf16, #tpu.memory_space<vmem>>, vector<128x128xbf16>
      %c0_14 = arith.constant 0 : index
      %c0_15 = arith.constant 0 : index
      %20 = vector.load %arg6[%c0_14, %c0_15] : memref<128x128xbf16, #tpu.memory_space<vmem>>, vector<128x128xbf16>
      %cst_16 = arith.constant dense<0.000000e+00> : vector<128x128xf32>
      %21 = tpu.matmul %19, %20, %cst_16 {dimension_numbers = #tpu.dot_dimension_numbers<[1], [0], [0], [1], [0, 0, 1, 1], [], []>} : vector<128x128xbf16>, vector<128x128xbf16>, vector<128x128xf32> -> vector<128x128xf32>
      %22 = arith.addf %18, %21 : vector<128x128xf32>
      %c0_17 = arith.constant 0 : index
      %c0_18 = arith.constant 0 : index
      %23 = vector.load %arg7[%c0_17, %c0_18] : memref<1x128xf32, #tpu.memory_space<vmem>>, vector<1x128xf32>
      %24 = vector.broadcast %23 : vector<1x128xf32> to vector<128x128xf32>
      %25 = arith.addf %22, %24 : vector<128x128xf32>
      %c0_19 = arith.constant 0 : index
      %c0_20 = arith.constant 0 : index
      %26 = vector.load %arg8[%c0_19, %c0_20] : memref<8x128xbf16, #tpu.memory_space<vmem>>, vector<8x128xbf16>
      %27 = arith.truncf %25 : vector<128x128xf32> to vector<128x128xbf16>
      %cst_21 = arith.constant dense<0.000000e+00> : vector<8x128xf32>
      %28 = tpu.matmul %26, %27, %cst_21 {dimension_numbers = #tpu.dot_dimension_numbers<[1], [0], [0], [1], [0, 0, 1, 1], [], []>} : vector<8x128xbf16>, vector<128x128xbf16>, vector<8x128xf32> -> vector<8x128xf32>
      %29 = arith.truncf %28 : vector<8x128xf32> to vector<8x128xbf16>
      %c0_22 = arith.constant 0 : index
      %c0_23 = arith.constant 0 : index
      %30 = vector.load %arg9[%c0_22, %c0_23] : memref<128x128xbf16, #tpu.memory_space<vmem>>, vector<128x128xbf16>
      %cst_24 = arith.constant dense<0.000000e+00> : vector<8x128xf32>
      %31 = tpu.matmul %29, %30, %cst_24 {dimension_numbers = #tpu.dot_dimension_numbers<[1], [0], [0], [1], [0, 0, 1, 1], [], []>} : vector<8x128xbf16>, vector<128x128xbf16>, vector<8x128xf32> -> vector<8x128xf32>
      %c0_25 = arith.constant 0 : index
      %c0_26 = arith.constant 0 : index
      %c0_27 = arith.constant 0 : index
      %32 = vector.load %arg10[%c0_25, %c0_26, %c0_27] : memref<1x8x128xf32, #tpu.memory_space<vmem>>, vector<1x8x128xf32>
      %33 = vector.shape_cast %32 : vector<1x8x128xf32> to vector<8x128xf32>
      %34 = vector.shape_cast %31 : vector<8x128xf32> to vector<1x8x128xf32>
      tpu.vector_store %arg10[%c0_25, %c0_26, %c0_27], %34 {strides = array<i32>} : memref<1x8x128xf32, #tpu.memory_space<vmem>>, vector<1x8x128xf32>,
    } else {
    }
    return
  }
  func.func @transform_0(%arg0: i32, %arg1: i32) -> (i32, i32) {
    %c0_i32 = arith.constant 0 : i32
    return %arg0, %arg1 : i32, i32
  }
  func.func @transform_1(%arg0: i32, %arg1: i32) -> (i32, i32) {
    %c0_i32 = arith.constant 0 : i32
    %c0_i32_0 = arith.constant 0 : i32
    %c0_i32_1 = arith.constant 0 : i32
    return %c0_i32, %c0_i32_0 : i32, i32
  }
  func.func @transform_2(%arg0: i32, %arg1: i32) -> (i32, i32) {
    %c0_i32 = arith.constant 0 : i32
    %c0_i32_0 = arith.constant 0 : i32
    return %arg0, %c0_i32 : i32, i32
  }
  func.func @transform_3(%arg0: i32, %arg1: i32) -> (i32, i32) {
    %c0_i32 = arith.constant 0 : i32
    %c0_i32_0 = arith.constant 0 : i32
    %c0_i32_1 = arith.constant 0 : i32
    return %c0_i32, %c0_i32_0 : i32, i32
  }
  func.func @transform_4(%arg0: i32, %arg1: i32) -> (i32, i32) {
    %c0_i32 = arith.constant 0 : i32
    %c0_i32_0 = arith.constant 0 : i32
    %c0_i32_1 = arith.constant 0 : i32
    return %c0_i32, %c0_i32_0 : i32, i32
  }
  func.func @transform_5(%arg0: i32, %arg1: i32) -> (i32, i32) {
    %c0_i32 = arith.constant 0 : i32
    %c0_i32_0 = arith.constant 0 : i32
    %c0_i32_1 = arith.constant 0 : i32
    return %c0_i32, %c0_i32_0 : i32, i32
  }
  func.func @transform_6(%arg0: i32, %arg1: i32) -> (i32, i32) {
    %c0_i32 = arith.constant 0 : i32
    %c0_i32_0 = arith.constant 0 : i32
    return %c0_i32, %arg0 : i32, i32
  }
  func.func @transform_7(%arg0: i32, %arg1: i32) -> (i32, i32) {
    %c0_i32 = arith.constant 0 : i32
    %c0_i32_0 = arith.constant 0 : i32
    %c0_i32_1 = arith.constant 0 : i32
    return %c0_i32, %c0_i32_0 : i32, i32
  }
  func.func @transform_8(%arg0: i32, %arg1: i32) -> (i32, i32, i32) {
    %c0_i32 = arith.constant 0 : i32
    %c0_i32_0 = arith.constant 0 : i32
    %c0_i32_1 = arith.constant 0 : i32
    return %arg0, %c0_i32, %c0_i32_0 : i32, i32, i32
  }
}

</mosaic_0001>

<bundles_post_ra>
// kernel: graph_conv_net_pallas.2
= control target key start
LH: loop header
LB: loop body
LE: loop exit
PB: predicated region body
PF: predicated region fallthrough
CT: control target
= control target key end

     0   :  { %s1384_s1 = inlined_call_operand.vmem [shape: bf16[128,128], index: 1, kind: input, shape index: {}, may-alias: {1,2}]   ;;  %s1385_s0 = inlined_call_operand.vmem [shape: bf16[128,128], index: 0, kind: input, shape index: {}]   ;;  %s1386_s4 = inlined_call_operand.vmem [shape: bf16[128,128], index: 4, kind: input, shape index: {}]   ;;  %s1387_s3 = inlined_call_operand.vmem [shape: bf16[128,128], index: 3, kind: input, shape index: {}]   ;;  %s1388_s2 = inlined_call_operand.vmem [shape: bf16[128,128], index: 2, kind: input, shape index: {}, may-alias: {1,2}]   ;;  %s1389_s5 = inlined_call_operand.vmem [shape: f32[1,128], index: 5, kind: input, shape index: {}]   ;;  %s1390_s6 = inlined_call_operand.vmem [shape: bf16[128,128], index: 6, kind: output, shape index: {}]  }
   0x1   :  { %v1144_v0 = vld [vmem:[%s1384_s1 + $0x38] sm:$0xff]   ;;  %v1145_v1 = vld [vmem:[%s1384_s1 + $0x30] sm:$0xff]   ;;  %v1146_v2 = vld [vmem:[%s1384_s1 + $0x28] sm:$0xff]  }
   0x2   :  { %1032 = vmatprep.subr.bf16.mxu0 %v1144_v0  ;;  %v1147_v3 = vld [vmem:[%s1384_s1 + $0x20] sm:$0xff]   ;;  %v1148_v5 = vld [vmem:[%s1384_s1 + $0x18] sm:$0xff]   ;;  %v1149_v6 = vld [vmem:[%s1384_s1 + $0x10] sm:$0xff]  }
   0x3   :  { %1033 = vmatpush3.bf16.msra.mxu0 %v1144_v0  ;;  %v1152_v4 = vld [vmem:[%s1385_s0] sm:$0xff]   ;;  %v1160_v7 = vld [vmem:[%s1386_s4 + $0x38] sm:$0xff]   ;;  %v1161_v8 = vld [vmem:[%s1386_s4 + $0x30] sm:$0xff]  }
   0x4   :  { %1034 = vmatprep.subr.bf16.mxu0 %v1145_v1  ;;  %1048 = vmatprep.mubr.bf16.mxu0 %v1152_v4  ;;  %v1150_v9 = vld [vmem:[%s1384_s1 + $0x8] sm:$0xff]   ;;  %v1151_v11 = vld [vmem:[%s1384_s1] sm:$0xff]   ;;  %v1164_v13 = vld [vmem:[%s1386_s4 + $0x18] sm:$0xff]  }
   0x5   :  { %1064 = vmatprep.subr.bf16.mxu1 %v1160_v7  ;;  %v1162_v10 = vld [vmem:[%s1386_s4 + $0x28] sm:$0xff]   ;;  %v1163_v12 = vld [vmem:[%s1386_s4 + $0x20] sm:$0xff]   ;;  %v1166_v15 = vld [vmem:[%s1387_s3 + $0x38] sm:$0xff]  }
   0x6   :  { %1065 = vmatpush3.bf16.msra.mxu1 %v1160_v7  ;;  %v1171_v14 = vld [vmem:[%s1388_s2] sm:$0xff]   ;;  %v1153_v16 = vld [vmem:[%s1385_s0 + $0x8] sm:$0xff]   ;;  %v1154_v17 = vld [vmem:[%s1385_s0 + $0x10] sm:$0xff]  }
   0x7   :  { %1035 = vmatpush3.bf16.msra.mxu0 %v1145_v1  ;;  %1066 = vmatprep.subr.bf16.mxu1 %v1161_v8  ;;  %v1165_v18 = vld [vmem:[%s1386_s4 + $0x10] sm:$0xff]   ;;  %v1167_v20 = vld [vmem:[%s1386_s4 + $0x8] sm:$0xff]   ;;  %v1155_v22 = vld [vmem:[%s1385_s0 + $0x18] sm:$0xff]  }
   0x8   :  { %1036 = vmatprep.subr.bf16.mxu0 %v1146_v2  ;;  %1080 = vmatprep.mubr.bf16.mxu1 %v1171_v14  ;;  %v1168_v19 = vld [vmem:[%s1387_s3 + $0x30] sm:$0xff]   ;;  %v1170_v21 = vld [vmem:[%s1387_s3 + $0x28] sm:$0xff]   ;;  %v1156_v23 = vld [vmem:[%s1385_s0 + $0x20] sm:$0xff]  }
   0x9   :  { %v1169_v24 = vld [vmem:[%s1386_s4] sm:$0xff]   ;;  %v1174_v26 = vld [vmem:[%s1387_s3 + $0x18] sm:$0xff]   ;;  %v1157_v27 = vld [vmem:[%s1385_s0 + $0x28] sm:$0xff]  }
   0xa   :  { %1067 = vmatpush3.bf16.msra.mxu1 %v1161_v8  ;;  %v1173_v25 = vld [vmem:[%s1387_s3 + $0x20] sm:$0xff]   ;;  %v1172_v28 = vld [vmem:[%s1388_s2 + $0x8] sm:$0xff]   ;;  %v1158_v29 = vld [vmem:[%s1385_s0 + $0x30] sm:$0xff]  }
   0xb   :  { %1037 = vmatpush3.bf16.msra.mxu0 %v1146_v2  ;;  %1068 = vmatprep.subr.bf16.mxu1 %v1162_v10  ;;  %v1175_v30 = vld [vmem:[%s1388_s2 + $0x10] sm:$0xff]   ;;  %v1159_v32 = vld [vmem:[%s1385_s0 + $0x38] sm:$0xff]   ;;  %v1178_v34 = vld [vmem:[%s1387_s3 + $0x8] sm:$0xff]  }
   0xc   :  { %1038 = vmatprep.subr.bf16.mxu0 %v1147_v3  ;;  %v1177_v31 = vld [vmem:[%s1387_s3 + $0x10] sm:$0xff]   ;;  %v1176_v33 = vld [vmem:[%s1388_s2 + $0x18] sm:$0xff]   ;;  %v1179_v35 = vld [vmem:[%s1388_s2 + $0x20] sm:$0xff]  }
   0xd   :  { %v1180_v36 = vld [vmem:[%s1388_s2 + $0x28] sm:$0xff]   ;;  %v1181_v37 = vld [vmem:[%s1387_s3] sm:$0xff]   ;;  %v1182_v38 = vld [vmem:[%s1388_s2 + $0x30] sm:$0xff]  }
   0xe   :  { %1069 = vmatpush3.bf16.msra.mxu1 %v1162_v10  ;;  %v1183_v39 = vld [vmem:[%s1388_s2 + $0x38] sm:$0xff]   ;;  %v1342_v14 = vld [vmem:[%s1389_s5] ss:$0 sm:$0xff] }
   0xf   :  { %1039 = vmatpush3.bf16.msra.mxu0 %v1147_v3  ;;  %1070 = vmatprep.subr.bf16.mxu1 %v1163_v12 }
  0x10   :  { %1040 = vmatprep.subr.bf16.mxu0 %v1148_v5 }
  0x12   :  { %1071 = vmatpush3.bf16.msra.mxu1 %v1163_v12 }
  0x13   :  { %1041 = vmatpush3.bf16.msra.mxu0 %v1148_v5  ;;  %1072 = vmatprep.subr.bf16.mxu1 %v1164_v13 }
  0x14   :  { %1042 = vmatprep.subr.bf16.mxu0 %v1149_v6 }
  0x16   :  { %1073 = vmatpush3.bf16.msra.mxu1 %v1164_v13 }
  0x17   :  { %1043 = vmatpush3.bf16.msra.mxu0 %v1149_v6  ;;  %1074 = vmatprep.subr.bf16.mxu1 %v1165_v18 }
  0x18   :  { %1044 = vmatprep.subr.bf16.mxu0 %v1150_v9 }
  0x1a   :  { %1075 = vmatpush3.bf16.msra.mxu1 %v1165_v18 }
  0x1b   :  { %1045 = vmatpush3.bf16.msra.mxu0 %v1150_v9  ;;  %1076 = vmatprep.subr.bf16.mxu1 %v1167_v20 }
  0x1c   :  { %1046 = vmatprep.subr.bf16.mxu0 %v1151_v11 }
  0x1e   :  { %1077 = vmatpush3.bf16.msra.mxu1 %v1167_v20 }
  0x1f   :  { %1047 = vmatpush3.bf16.msra.mxu0 %v1151_v11  ;;  %1078 = vmatprep.subr.bf16.mxu1 %v1169_v24 }
  0x20   :  { %1096 = vmatprep.subr.bf16.mxu0 %v1166_v15 }
  0x22   :  { %1049 = vmatmul.mubr.bf16.vlgmr.msra.gmra.mxu0 %v1153_v16  ;;  %1079 = vmatpush3.bf16.msra.mxu1 %v1169_v24 }
  0x23   :  { %1052 = vmatprep.mubr.bf16.mxu0 %v1154_v17  ;;  %1097 = vmatpush3.bf16.msra.mxu0 %v1166_v15 }
  0x24   :  { %1098 = vmatprep.subr.bf16.mxu0 %v1168_v19  ;;  %1128 = vmatprep.subr.bf16.mxu1 %v1166_v15 }
  0x25   :  { %1081 = vmatmul.mubr.bf16.vlgmr.msra.gmra.mxu1 %v1172_v28 }
  0x26   :  { %1136 = vmatpush3.bf16.msra.mxu1 %v1166_v15  ;;  %1084 = vmatprep.mubr.bf16.mxu1 %v1175_v30 }
  0x27   :  { %1099 = vmatpush3.bf16.msra.mxu0 %v1168_v19  ;;  %1129 = vmatprep.subr.bf16.mxu1 %v1168_v19 }
  0x28   :  { %1100 = vmatprep.subr.bf16.mxu0 %v1170_v21 }
  0x2a   :  { %1053 = vmatmul.mubr.bf16.gmra.mxu0 %v1155_v22  ;;  %1137 = vmatpush3.bf16.msra.mxu1 %v1168_v19 }
  0x2b   :  { %1056 = vmatprep.mubr.bf16.mxu0 %v1156_v23  ;;  %1101 = vmatpush3.bf16.msra.mxu0 %v1170_v21 }
  0x2c   :  { %1102 = vmatprep.subr.bf16.mxu0 %v1173_v25  ;;  %1130 = vmatprep.subr.bf16.mxu1 %v1170_v21 }
  0x2d   :  { %1085 = vmatmul.mubr.bf16.gmra.mxu1 %v1176_v33 }
  0x2e   :  { %1138 = vmatpush3.bf16.msra.mxu1 %v1170_v21  ;;  %1088 = vmatprep.mubr.bf16.mxu1 %v1179_v35 }
  0x2f   :  { %1103 = vmatpush3.bf16.msra.mxu0 %v1173_v25  ;;  %1131 = vmatprep.subr.bf16.mxu1 %v1173_v25 }
  0x30   :  { %1104 = vmatprep.subr.bf16.mxu0 %v1174_v26 }
  0x32   :  { %1057 = vmatmul.mubr.bf16.gmra.mxu0 %v1157_v27  ;;  %1139 = vmatpush3.bf16.msra.mxu1 %v1173_v25 }
  0x33   :  { %1060 = vmatprep.mubr.bf16.mxu0 %v1158_v29  ;;  %1105 = vmatpush3.bf16.msra.mxu0 %v1174_v26 }
  0x34   :  { %1106 = vmatprep.subr.bf16.mxu0 %v1177_v31  ;;  %1132 = vmatprep.subr.bf16.mxu1 %v1174_v26 }
  0x35   :  { %1089 = vmatmul.mubr.bf16.gmra.mxu1 %v1180_v36 }
  0x36   :  { %1140 = vmatpush3.bf16.msra.mxu1 %v1174_v26  ;;  %1092 = vmatprep.mubr.bf16.mxu1 %v1182_v38 }
  0x37   :  { %1107 = vmatpush3.bf16.msra.mxu0 %v1177_v31  ;;  %1133 = vmatprep.subr.bf16.mxu1 %v1177_v31 }
  0x38   :  { %1108 = vmatprep.subr.bf16.mxu0 %v1178_v34 }
  0x3a   :  { %1061 = vmatmul.mubr.bf16.gmra.mxu0 %v1159_v32  ;;  %1141 = vmatpush3.bf16.msra.mxu1 %v1177_v31 }
  0x3b   :  { %1134 = vmatprep.subr.bf16.mxu1 %v1178_v34  ;;  %1109 = vmatpush3.bf16.msra.mxu0 %v1178_v34 }
  0x3c   :  { %1110 = vmatprep.subr.bf16.mxu0 %v1181_v37 }
  0x3d   :  { %1093 = vmatmul.mubr.bf16.gmra.mxu1 %v1183_v39 }
  0x3e   :  { %1142 = vmatpush3.bf16.msra.mxu1 %v1178_v34 }
  0x3f   :  { %1135 = vmatprep.subr.bf16.mxu1 %v1181_v37  ;;  %1111 = vmatpush3.bf16.msra.mxu0 %v1181_v37 }
  0x42   :  { %1143 = vmatpush3.bf16.msra.mxu1 %v1181_v37 }
  0xe2   :  { %v1050_v40 = vpop.f32.mrf.mxu0 }
  0xe4   :  { %v191_v41 = vpop.f32.mrf.mxu0 }
  0xe5   :  { %v1082_v0 = vpop.f32.mrf.mxu1 }
  0xe6   :  { %v1051_v42 = vpop.f32.mrf.mxu0 }
  0xe7   :  { %v346_v45 = vpack.c.bf16 %v1051_v42, %v1050_v40  ;;  %v531_v1 = vpop.f32.mrf.mxu1 }
  0xe8   :  { %v194_v43 = vpop.f32.mrf.mxu0 }
  0xe9   :  { %v345_v44 = vpack.c.bf16 %v194_v43, %v191_v41  ;;  %v1083_v2 = vpop.f32.mrf.mxu1 }
  0xea   :  { %v1054_v46 = vpop.f32.mrf.mxu0 }
  0xeb   :  { %1112 = vmatprep.mubr.bf16.mxu0 %v345_v44  ;;  %v534_v3 = vpop.f32.mrf.mxu1 }
  0xec   :  { %v207_v47 = vpop.f32.mrf.mxu0  ;;  %1113 = vmatmul.mubr.bf16.vlgmr.msra.gmra.mxu0 %v346_v45 }
  0xed   :  { %v1086_v4 = vpop.f32.mrf.mxu1 }
  0xee   :  { %v1055_v48 = vpop.f32.mrf.mxu0 }
  0xef   :  { %v348_v51 = vpack.c.bf16 %v1055_v48, %v1054_v46  ;;  %v547_v5 = vpop.f32.mrf.mxu1 }
  0xf0   :  { %v210_v49 = vpop.f32.mrf.mxu0 }
  0xf1   :  { %v347_v50 = vpack.c.bf16 %v210_v49, %v207_v47  ;;  %v1087_v6 = vpop.f32.mrf.mxu1 }
  0xf2   :  { %v1058_v52 = vpop.f32.mrf.mxu0 }
  0xf3   :  { %1116 = vmatprep.mubr.bf16.mxu0 %v347_v50  ;;  %v550_v7 = vpop.f32.mrf.mxu1 }
  0xf4   :  { %v223_v53 = vpop.f32.mrf.mxu0  ;;  %1117 = vmatmul.mubr.bf16.gmra.mxu0 %v348_v51 }
  0xf5   :  { %v1090_v8 = vpop.f32.mrf.mxu1 }
  0xf6   :  { %v1059_v54 = vpop.f32.mrf.mxu0 }
  0xf7   :  { %v350_v57 = vpack.c.bf16 %v1059_v54, %v1058_v52  ;;  %v563_v9 = vpop.f32.mrf.mxu1 }
  0xf8   :  { %v226_v55 = vpop.f32.mrf.mxu0 }
  0xf9   :  { %v349_v56 = vpack.c.bf16 %v226_v55, %v223_v53  ;;  %v1091_v10 = vpop.f32.mrf.mxu1 }
  0xfa   :  { %v1062_v58 = vpop.f32.mrf.mxu0 }
  0xfb   :  { %1120 = vmatprep.mubr.bf16.mxu1 %v349_v56  ;;  %v566_v11 = vpop.f32.mrf.mxu1 }
  0xfc   :  { %v239_v59 = vpop.f32.mrf.mxu0  ;;  %1121 = vmatmul.mubr.bf16.vlgmr.msra.gmra.mxu1 %v350_v57 }
  0xfd   :  { %v1094_v15 = vpop.f32.mrf.mxu1 }
  0xfe   :  { %v1063_v60 = vpop.f32.mrf.mxu0 }
  0xff   :  { %v352_v63 = vpack.c.bf16 %v1063_v60, %v1062_v58  ;;  %v579_v21 = vpop.f32.mrf.mxu1 }
 0x100   :  { %v242_v61 = vpop.f32.mrf.mxu0 }
 0x101   :  { %v351_v62 = vpack.c.bf16 %v242_v61, %v239_v59  ;;  %v1095_v31 = vpop.f32.mrf.mxu1 }
 0x103   :  { %1124 = vmatprep.mubr.bf16.mxu1 %v351_v62  ;;  %v582_v41 = vpop.f32.mrf.mxu1 }
 0x104   :  { %1125 = vmatmul.mubr.bf16.gmra.mxu1 %v352_v63 }
 0x1ac   :  { %v1114_v12 = vpop.f32.mrf.mxu0 }
 0x1ad   :  { %v685_v13 = vadd.f32 %v1114_v12, %v1082_v0 }
 0x1ae   :  { %v676_v16 = vpop.f32.mrf.mxu0 }
 0x1af   :  { %v677_v17 = vadd.f32 %v676_v16, %v531_v1  ;;  %v748_v19 = vadd.f32 %v1342_v14, %v685_v13 }
 0x1b0   :  { %v1115_v18 = vpop.f32.mrf.mxu0 }
 0x1b1   :  { %v688_v20 = vadd.f32 %v1115_v18, %v1083_v2  ;;  %v746_v23 = vadd.f32 %v1342_v14, %v677_v17  ;;  %v764_v27 = vmax.f32 %v748_v19, 0.0 }
 0x1b2   :  { %v679_v22 = vpop.f32.mrf.mxu0 }
 0x1b3   :  { %v749_v24 = vadd.f32 %v1342_v14, %v688_v20  ;;  %v680_v25 = vadd.f32 %v679_v22, %v534_v3  ;;  %v762_v33 = vmax.f32 %v746_v23, 0.0 }
 0x1b4   :  { %v1118_v26 = vpop.f32.mrf.mxu0 }
 0x1b5   :  { %v765_v28 = vmax.f32 %v749_v24, 0.0  ;;  %v747_v29 = vadd.f32 %v1342_v14, %v680_v25  ;;  %v701_v30 = vadd.f32 %v1118_v26, %v1086_v4 }
 0x1b6   :  { %v692_v32 = vpop.f32.mrf.mxu0 }
 0x1b7   :  { %v945_v34 = vpack.c.bf16 %v765_v28, %v764_v27  ;;  %v763_v35 = vmax.f32 %v747_v29, 0.0  ;;  %v693_v36 = vadd.f32 %v692_v32, %v547_v5  ;;  %v752_v39 = vadd.f32 %v1342_v14, %v701_v30 }
 0x1b8   :  { %v1119_v37 = vpop.f32.mrf.mxu0 }
 0x1b9   :  { %977 = vst [vmem:[%s1390_s6 + $0x8] sm:$0xff] %v945_v34   ;;  %v940_v38 = vpack.c.bf16 %v763_v35, %v762_v33  ;;  %v704_v40 = vadd.f32 %v1119_v37, %v1087_v6  ;;  %v750_v43 = vadd.f32 %v1342_v14, %v693_v36  ;;  %v768_v47 = vmax.f32 %v752_v39, 0.0 }
 0x1ba   :  { %v695_v42 = vpop.f32.mrf.mxu0 }
 0x1bb   :  { %941 = vst [vmem:[%s1390_s6] sm:$0xff] %v940_v38   ;;  %v753_v44 = vadd.f32 %v1342_v14, %v704_v40  ;;  %v696_v45 = vadd.f32 %v695_v42, %v550_v7  ;;  %v766_v52 = vmax.f32 %v750_v43, 0.0 }
 0x1bc   :  { %v1122_v46 = vpop.f32.mrf.mxu1 }
 0x1bd   :  { %v769_v48 = vmax.f32 %v753_v44, 0.0  ;;  %v751_v49 = vadd.f32 %v1342_v14, %v696_v45  ;;  %v717_v50 = vadd.f32 %v1122_v46, %v1090_v8 }
 0x1be   :  { %v708_v51 = vpop.f32.mrf.mxu1 }
 0x1bf   :  { %v955_v53 = vpack.c.bf16 %v769_v48, %v768_v47  ;;  %v767_v54 = vmax.f32 %v751_v49, 0.0  ;;  %v709_v55 = vadd.f32 %v708_v51, %v563_v9  ;;  %v756_v58 = vadd.f32 %v1342_v14, %v717_v50 }
 0x1c0   :  { %v1123_v56 = vpop.f32.mrf.mxu1 }
 0x1c1   :  { %979 = vst [vmem:[%s1390_s6 + $0x18] sm:$0xff] %v955_v53   ;;  %v950_v57 = vpack.c.bf16 %v767_v54, %v766_v52  ;;  %v720_v59 = vadd.f32 %v1123_v56, %v1091_v10  ;;  %v754_v61 = vadd.f32 %v1342_v14, %v709_v55  ;;  %v772_v1 = vmax.f32 %v756_v58, 0.0 }
 0x1c2   :  { %v711_v60 = vpop.f32.mrf.mxu1 }
 0x1c3   :  { %978 = vst [vmem:[%s1390_s6 + $0x10] sm:$0xff] %v950_v57   ;;  %v757_v62 = vadd.f32 %v1342_v14, %v720_v59  ;;  %v712_v63 = vadd.f32 %v711_v60, %v566_v11  ;;  %v770_v6 = vmax.f32 %v754_v61, 0.0 }
 0x1c4   :  { %v1126_v0 = vpop.f32.mrf.mxu1 }
 0x1c5   :  { %v773_v2 = vmax.f32 %v757_v62, 0.0  ;;  %v755_v3 = vadd.f32 %v1342_v14, %v712_v63  ;;  %v733_v4 = vadd.f32 %v1126_v0, %v1094_v15 }
 0x1c6   :  { %v724_v5 = vpop.f32.mrf.mxu1 }
 0x1c7   :  { %v965_v7 = vpack.c.bf16 %v773_v2, %v772_v1  ;;  %v771_v8 = vmax.f32 %v755_v3, 0.0  ;;  %v725_v9 = vadd.f32 %v724_v5, %v579_v21  ;;  %v760_v13 = vadd.f32 %v1342_v14, %v733_v4 }
 0x1c8   :  { %v1127_v10 = vpop.f32.mrf.mxu1 }
 0x1c9   :  { %981 = vst [vmem:[%s1390_s6 + $0x28] sm:$0xff] %v965_v7   ;;  %v960_v12 = vpack.c.bf16 %v771_v8, %v770_v6  ;;  %v736_v11 = vadd.f32 %v1127_v10, %v1095_v31  ;;  %v758_v15 = vadd.f32 %v1342_v14, %v725_v9  ;;  %v776_v19 = vmax.f32 %v760_v13, 0.0 }
 0x1ca   :  { %v727_v16 = vpop.f32.mrf.mxu1 }
 0x1cb   :  { %980 = vst [vmem:[%s1390_s6 + $0x20] sm:$0xff] %v960_v12   ;;  %v761_v17 = vadd.f32 %v1342_v14, %v736_v11  ;;  %v728_v18 = vadd.f32 %v727_v16, %v582_v41  ;;  %v774_v22 = vmax.f32 %v758_v15, 0.0 }
 0x1cd   :  { %v777_v20 = vmax.f32 %v761_v17, 0.0  ;;  %v759_v21 = vadd.f32 %v1342_v14, %v728_v18 }
 0x1cf   :  { %v975_v23 = vpack.c.bf16 %v777_v20, %v776_v19  ;;  %v775_v24 = vmax.f32 %v759_v21, 0.0 }
 0x1d1   :  { %983 = vst [vmem:[%s1390_s6 + $0x38] sm:$0xff] %v975_v23   ;;  %v970_v25 = vpack.c.bf16 %v775_v24, %v774_v22 }
 0x1d3   :  { %982 = vst [vmem:[%s1390_s6 + $0x30] sm:$0xff] %v970_v25  }

// kernel: graph_conv_net_pallas.3
= control target key start
LH: loop header
LB: loop body
LE: loop exit
PB: predicated region body
PF: predicated region fallthrough
CT: control target
= control target key end

     0   :  { %vm1231_vm0 = vmmov 0   ;;  %s1469_s1 = inlined_call_operand.vmem [shape: bf16[128,128], index: 1, kind: input, shape index: {}, may-alias: {1,2}]   ;;  %s1470_s0 = inlined_call_operand.vmem [shape: bf16[128,128], index: 0, kind: input, shape index: {}]   ;;  %s1471_s4 = inlined_call_operand.vmem [shape: bf16[128,128], index: 4, kind: input, shape index: {}]   ;;  %s1472_s3 = inlined_call_operand.vmem [shape: bf16[128,128], index: 3, kind: input, shape index: {}]   ;;  %s1473_s2 = inlined_call_operand.vmem [shape: bf16[128,128], index: 2, kind: input, shape index: {}, may-alias: {1,2}]   ;;  %s1474_s7 = inlined_call_operand.vmem [shape: bf16[128,128], index: 7, kind: input, shape index: {}]   ;;  %s1475_s5 = inlined_call_operand.vmem [shape: f32[1,128], index: 5, kind: input, shape index: {}]   ;;  %s1476_s6 = inlined_call_operand.vmem [shape: bf16[8,128], index: 6, kind: input, shape index: {}]   ;;  %s1477_s8 = inlined_call_operand.vmem [shape: f32[1,8,128], index: 8, kind: output, shape index: {}]  }
   0x1   :  { %v1182_v0 = vld [vmem:[%s1469_s1 + $0x38] sm:$0xff]   ;;  %v1183_v1 = vld [vmem:[%s1469_s1 + $0x30] sm:$0xff]   ;;  %v1184_v2 = vld [vmem:[%s1469_s1 + $0x28] sm:$0xff]  }
   0x2   :  { %1044 = vmatprep.subr.bf16.mxu0 %v1182_v0  ;;  %v1185_v3 = vld [vmem:[%s1469_s1 + $0x20] sm:$0xff]   ;;  %v1186_v5 = vld [vmem:[%s1469_s1 + $0x18] sm:$0xff]   ;;  %v1187_v6 = vld [vmem:[%s1469_s1 + $0x10] sm:$0xff]  }
   0x3   :  { %1045 = vmatpush3.bf16.msra.mxu0 %v1182_v0  ;;  %v1190_v4 = vld [vmem:[%s1470_s0] sm:$0xff]   ;;  %v1198_v7 = vld [vmem:[%s1471_s4 + $0x38] sm:$0xff]   ;;  %v1199_v8 = vld [vmem:[%s1471_s4 + $0x30] sm:$0xff]   ;;  %v1230_v0 = vmov 0.0  }
   0x4   :  { %1046 = vmatprep.subr.bf16.mxu0 %v1183_v1  ;;  %1060 = vmatprep.mubr.bf16.mxu0 %v1190_v4  ;;  %v1188_v9 = vld [vmem:[%s1469_s1 + $0x8] sm:$0xff]   ;;  %v1189_v11 = vld [vmem:[%s1469_s1] sm:$0xff]   ;;  %v1200_v13 = vld [vmem:[%s1472_s3 + $0x38] sm:$0xff]  }
   0x5   :  { %1076 = vmatprep.subr.bf16.mxu1 %v1198_v7  ;;  %v1201_v10 = vld [vmem:[%s1471_s4 + $0x28] sm:$0xff]   ;;  %v1203_v12 = vld [vmem:[%s1471_s4 + $0x20] sm:$0xff]   ;;  %v1205_v15 = vld [vmem:[%s1471_s4 + $0x18] sm:$0xff]  }
   0x6   :  { %1077 = vmatpush3.bf16.msra.mxu1 %v1198_v7  ;;  %v1191_v14 = vld [vmem:[%s1470_s0 + $0x8] sm:$0xff]   ;;  %v1192_v16 = vld [vmem:[%s1470_s0 + $0x10] sm:$0xff]   ;;  %v1193_v21 = vld [vmem:[%s1470_s0 + $0x18] sm:$0xff]  }
   0x7   :  { %1047 = vmatpush3.bf16.msra.mxu0 %v1183_v1  ;;  %1078 = vmatprep.subr.bf16.mxu1 %v1199_v8  ;;  %v1202_v17 = vld [vmem:[%s1472_s3 + $0x30] sm:$0xff]   ;;  %v1204_v19 = vld [vmem:[%s1472_s3 + $0x28] sm:$0xff]   ;;  %v1194_v22 = vld [vmem:[%s1470_s0 + $0x20] sm:$0xff]  }
   0x8   :  { %1048 = vmatprep.subr.bf16.mxu0 %v1184_v2  ;;  %v1207_v18 = vld [vmem:[%s1471_s4 + $0x10] sm:$0xff]   ;;  %v1209_v20 = vld [vmem:[%s1471_s4 + $0x8] sm:$0xff]   ;;  %v1206_v23 = vld [vmem:[%s1472_s3 + $0x20] sm:$0xff]  }
   0x9   :  { %v1208_v24 = vld [vmem:[%s1472_s3 + $0x18] sm:$0xff]   ;;  %v1195_v25 = vld [vmem:[%s1470_s0 + $0x28] sm:$0xff]   ;;  %v1196_v26 = vld [vmem:[%s1470_s0 + $0x30] sm:$0xff]  }
   0xa   :  { %1079 = vmatpush3.bf16.msra.mxu1 %v1199_v8  ;;  %v1210_v27 = vld [vmem:[%s1472_s3 + $0x10] sm:$0xff]   ;;  %v1197_v28 = vld [vmem:[%s1470_s0 + $0x38] sm:$0xff]   ;;  %v1211_v29 = vld [vmem:[%s1471_s4] sm:$0xff]  }
   0xb   :  { %1049 = vmatpush3.bf16.msra.mxu0 %v1184_v2  ;;  %1080 = vmatprep.subr.bf16.mxu1 %v1201_v10  ;;  %v1212_v30 = vld [vmem:[%s1472_s3 + $0x8] sm:$0xff]   ;;  %v1213_v31 = vld [vmem:[%s1473_s2] sm:$0xff]   ;;  %v1216_v34 = vld [vmem:[%s1473_s2 + $0x10] sm:$0xff]  }
   0xc   :  { %1050 = vmatprep.subr.bf16.mxu0 %v1185_v3  ;;  %v1214_v32 = vld [vmem:[%s1473_s2 + $0x8] sm:$0xff]   ;;  %1092 = vmatprep.mubr.bf16.mxu1 %v1213_v31  ;;  %v1215_v33 = vld [vmem:[%s1472_s3] sm:$0xff]   ;;  %v1217_v35 = vld [vmem:[%s1473_s2 + $0x18] sm:$0xff]  }
   0xd   :  { %v1218_v36 = vld [vmem:[%s1473_s2 + $0x20] sm:$0xff]   ;;  %v1219_v37 = vld [vmem:[%s1473_s2 + $0x28] sm:$0xff]   ;;  %v1220_v38 = vld [vmem:[%s1473_s2 + $0x30] sm:$0xff]  }
   0xe   :  { %1081 = vmatpush3.bf16.msra.mxu1 %v1201_v10  ;;  %v1221_v39 = vld [vmem:[%s1473_s2 + $0x38] sm:$0xff]   ;;  %v1223_v2 = vld [vmem:[%s1474_s7 + $0x30] sm:$0xff]   ;;  %v1225_v4 = vld [vmem:[%s1474_s7 + $0x20] sm:$0xff]  }
   0xf   :  { %1051 = vmatpush3.bf16.msra.mxu0 %v1185_v3  ;;  %1082 = vmatprep.subr.bf16.mxu1 %v1203_v12  ;;  %v1222_v1 = vld [vmem:[%s1474_s7 + $0x38] sm:$0xff]   ;;  %v1224_v3 = vld [vmem:[%s1474_s7 + $0x28] sm:$0xff]  }
  0x10   :  { %1052 = vmatprep.subr.bf16.mxu0 %v1186_v5  ;;  %v1228_v7 = vld [vmem:[%s1474_s7 + $0x8] sm:$0xff]  }
  0x12   :  { %1083 = vmatpush3.bf16.msra.mxu1 %v1203_v12 }
  0x13   :  { %1053 = vmatpush3.bf16.msra.mxu0 %v1186_v5  ;;  %1084 = vmatprep.subr.bf16.mxu1 %v1205_v15  ;;  %v1226_v5 = vld [vmem:[%s1474_s7 + $0x18] sm:$0xff]  }
  0x14   :  { %1054 = vmatprep.subr.bf16.mxu0 %v1187_v6 }
  0x16   :  { %1085 = vmatpush3.bf16.msra.mxu1 %v1205_v15 }
  0x17   :  { %1055 = vmatpush3.bf16.msra.mxu0 %v1187_v6  ;;  %1086 = vmatprep.subr.bf16.mxu1 %v1207_v18  ;;  %v1227_v6 = vld [vmem:[%s1474_s7 + $0x10] sm:$0xff]  }
  0x18   :  { %1056 = vmatprep.subr.bf16.mxu0 %v1188_v9 }
  0x1a   :  { %1087 = vmatpush3.bf16.msra.mxu1 %v1207_v18 }
  0x1b   :  { %1057 = vmatpush3.bf16.msra.mxu0 %v1188_v9  ;;  %1088 = vmatprep.subr.bf16.mxu1 %v1209_v20 }
  0x1c   :  { %1058 = vmatprep.subr.bf16.mxu0 %v1189_v11 }
  0x1e   :  { %1089 = vmatpush3.bf16.msra.mxu1 %v1209_v20 }
  0x1f   :  { %1059 = vmatpush3.bf16.msra.mxu0 %v1189_v11  ;;  %1090 = vmatprep.subr.bf16.mxu1 %v1211_v29 }
  0x20   :  { %1108 = vmatprep.subr.bf16.mxu0 %v1200_v13 }
  0x22   :  { %1061 = vmatmul.mubr.bf16.vlgmr.msra.gmra.mxu0 %v1191_v14  ;;  %1091 = vmatpush3.bf16.msra.mxu1 %v1211_v29 }
  0x23   :  { %1064 = vmatprep.mubr.bf16.mxu0 %v1192_v16  ;;  %1109 = vmatpush3.bf16.msra.mxu0 %v1200_v13 }
  0x24   :  { %1110 = vmatprep.subr.bf16.mxu0 %v1202_v17  ;;  %1140 = vmatprep.subr.bf16.mxu1 %v1230_v0 }
  0x25   :  { %1093 = vmatmul.mubr.bf16.vlgmr.msra.gmra.mxu1 %v1214_v32 }
  0x26   :  { %1096 = vmatprep.mubr.bf16.mxu1 %v1216_v34 }
  0x27   :  { %1111 = vmatpush3.bf16.msra.mxu0 %v1202_v17 }
  0x28   :  { %1112 = vmatprep.subr.bf16.mxu0 %v1204_v19 }
  0x2a   :  { %1065 = vmatmul.mubr.bf16.gmra.mxu0 %v1193_v21 }
  0x2b   :  { %1068 = vmatprep.mubr.bf16.mxu0 %v1194_v22  ;;  %1113 = vmatpush3.bf16.msra.mxu0 %v1204_v19 }
  0x2c   :  { %1114 = vmatprep.subr.bf16.mxu0 %v1206_v23 }
  0x2d   :  { %1097 = vmatmul.mubr.bf16.gmra.mxu1 %v1217_v35 }
  0x2e   :  { %1100 = vmatprep.mubr.bf16.mxu1 %v1218_v36 }
  0x2f   :  { %1115 = vmatpush3.bf16.msra.mxu0 %v1206_v23 }
  0x30   :  { %1116 = vmatprep.subr.bf16.mxu0 %v1208_v24 }
  0x32   :  { %1069 = vmatmul.mubr.bf16.gmra.mxu0 %v1195_v25 }
  0x33   :  { %1072 = vmatprep.mubr.bf16.mxu0 %v1196_v26  ;;  %1117 = vmatpush3.bf16.msra.mxu0 %v1208_v24 }
  0x34   :  { %1118 = vmatprep.subr.bf16.mxu0 %v1210_v27 }
  0x35   :  { %1101 = vmatmul.mubr.bf16.gmra.mxu1 %v1219_v37 }
  0x36   :  { %1104 = vmatprep.mubr.bf16.mxu1 %v1220_v38 }
  0x37   :  { %1119 = vmatpush3.bf16.msra.mxu0 %v1210_v27 }
  0x38   :  { %1120 = vmatprep.subr.bf16.mxu0 %v1212_v30 }
  0x3a   :  { %1073 = vmatmul.mubr.bf16.gmra.mxu0 %v1197_v28 }
  0x3b   :  { %1121 = vmatpush3.bf16.msra.mxu0 %v1212_v30 }
  0x3c   :  { %1122 = vmatprep.subr.bf16.mxu0 %v1215_v33 }
  0x3d   :  { %1105 = vmatmul.mubr.bf16.gmra.mxu1 %v1221_v39 }
  0x3e   :  { %1156 = vmatprep.mubr.msk.bf16.mxu1 %vm1231_vm0, %v1230_v0 }
  0x3f   :  { %1123 = vmatpush3.bf16.msra.mxu0 %v1215_v33 }
  0x40   :  { %1160 = vmatprep.subr.bf16.mxu0 %v1230_v0 }
  0xe2   :  { %v1062_v40 = vpop.f32.mrf.mxu0 }
  0xe4   :  { %v197_v41 = vpop.f32.mrf.mxu0 }
  0xe5   :  { %v1429_v8 = vpop.f32.mrf.mxu1 }
  0xe6   :  { %v1063_v42 = vpop.f32.mrf.mxu0 }
  0xe7   :  { %v352_v45 = vpack.c.bf16 %v1063_v42, %v1062_v40  ;;  %v1431_v9 = vpop.f32.mrf.mxu1  ;;  %v969_v40 = vld [vmem:[%s1475_s5] ss:$0 sm:$0xff] }
  0xe8   :  { %v200_v43 = vpop.f32.mrf.mxu0 }
  0xe9   :  { %v351_v44 = vpack.c.bf16 %v200_v43, %v197_v41  ;;  %v1433_v10 = vpop.f32.mrf.mxu1 }
  0xea   :  { %v1066_v46 = vpop.f32.mrf.mxu0 }
  0xeb   :  { %1124 = vmatprep.mubr.bf16.mxu0 %v351_v44  ;;  %v1435_v11 = vpop.f32.mrf.mxu1 }
  0xec   :  { %v213_v47 = vpop.f32.mrf.mxu0  ;;  %1125 = vmatmul.mubr.bf16.vlgmr.msra.gmra.mxu0 %v352_v45 }
  0xed   :  { %1161 = vmatpush3.bf16.msra.mxu0 %v1222_v1  ;;  %v1098_v12 = vpop.f32.mrf.mxu1 }
  0xee   :  { %v1067_v48 = vpop.f32.mrf.mxu0  ;;  %1162 = vmatprep.subr.bf16.mxu0 %v1230_v0 }
  0xef   :  { %v354_v51 = vpack.c.bf16 %v1067_v48, %v1066_v46  ;;  %v553_v13 = vpop.f32.mrf.mxu1 }
  0xf0   :  { %v216_v49 = vpop.f32.mrf.mxu0 }
  0xf1   :  { %v353_v50 = vpack.c.bf16 %v216_v49, %v213_v47  ;;  %1163 = vmatpush3.bf16.msra.mxu0 %v1223_v2  ;;  %v1099_v14 = vpop.f32.mrf.mxu1 }
  0xf2   :  { %v1070_v52 = vpop.f32.mrf.mxu0  ;;  %1164 = vmatprep.subr.bf16.mxu0 %v1230_v0 }
  0xf3   :  { %1128 = vmatprep.mubr.bf16.mxu0 %v353_v50  ;;  %v556_v15 = vpop.f32.mrf.mxu1 }
  0xf4   :  { %v229_v53 = vpop.f32.mrf.mxu0  ;;  %1129 = vmatmul.mubr.bf16.gmra.mxu0 %v354_v51 }
  0xf5   :  { %1165 = vmatpush3.bf16.msra.mxu0 %v1224_v3  ;;  %v1102_v18 = vpop.f32.mrf.mxu1 }
  0xf6   :  { %v1071_v54 = vpop.f32.mrf.mxu0  ;;  %1166 = vmatprep.subr.bf16.mxu0 %v1230_v0 }
  0xf7   :  { %v356_v57 = vpack.c.bf16 %v1071_v54, %v1070_v52  ;;  %v569_v21 = vpop.f32.mrf.mxu1 }
  0xf8   :  { %v232_v55 = vpop.f32.mrf.mxu0 }
  0xf9   :  { %v355_v56 = vpack.c.bf16 %v232_v55, %v229_v53  ;;  %1167 = vmatpush3.bf16.msra.mxu0 %v1225_v4  ;;  %v1103_v24 = vpop.f32.mrf.mxu1 }
  0xfa   :  { %v1074_v58 = vpop.f32.mrf.mxu0  ;;  %1168 = vmatprep.subr.bf16.mxu0 %v1230_v0 }
  0xfb   :  { %1132 = vmatprep.mubr.bf16.mxu0 %v355_v56  ;;  %v572_v27 = vpop.f32.mrf.mxu1 }
  0xfc   :  { %v245_v59 = vpop.f32.mrf.mxu0  ;;  %1133 = vmatmul.mubr.bf16.gmra.mxu0 %v356_v57 }
  0xfd   :  { %1169 = vmatpush3.bf16.msra.mxu0 %v1226_v5  ;;  %v1106_v29 = vpop.f32.mrf.mxu1 }
  0xfe   :  { %v1075_v60 = vpop.f32.mrf.mxu0  ;;  %1170 = vmatprep.subr.bf16.mxu0 %v1230_v0 }
  0xff   :  { %v358_v63 = vpack.c.bf16 %v1075_v60, %v1074_v58  ;;  %v585_v32 = vpop.f32.mrf.mxu1 }
 0x100   :  { %v248_v61 = vpop.f32.mrf.mxu0 }
 0x101   :  { %v357_v62 = vpack.c.bf16 %v248_v61, %v245_v59  ;;  %1171 = vmatpush3.bf16.msra.mxu0 %v1227_v6  ;;  %v1107_v35 = vpop.f32.mrf.mxu1 }
 0x102   :  { %1172 = vmatprep.subr.bf16.mxu0 %v1230_v0 }
 0x103   :  { %1136 = vmatprep.mubr.bf16.mxu0 %v357_v62  ;;  %v588_v41 = vpop.f32.mrf.mxu1 }
 0x104   :  { %1137 = vmatmul.mubr.bf16.gmra.mxu0 %v358_v63 }
 0x105   :  { %1176 = vmatprep.mubr.msk.bf16.mxu0 %vm1231_vm0, %v1230_v0  ;;  %1173 = vmatpush3.bf16.msra.mxu0 %v1228_v7 }
 0x106   :  { %1174 = vmatprep.subr.bf16.mxu0 %v1230_v0 }
 0x1ac   :  { %v1437_v16 = vpop.f32.mrf.mxu0 }
 0x1ad   :  { %v691_v7 = vadd.f32 %v1437_v16, %v1429_v8 }
 0x1ae   :  { %v1439_v17 = vpop.f32.mrf.mxu0 }
 0x1b0   :  { %v1127_v19 = vpop.f32.mrf.mxu0 }
 0x1b1   :  { %v694_v4 = vadd.f32 %v1127_v19, %v1433_v10 }
 0x1b2   :  { %v1441_v20 = vpop.f32.mrf.mxu0 }
 0x1b4   :  { %v1130_v22 = vpop.f32.mrf.mxu0 }
 0x1b5   :  { %v707_v60 = vadd.f32 %v1130_v22, %v1098_v12 }
 0x1b6   :  { %v698_v23 = vpop.f32.mrf.mxu0 }
 0x1b7   :  { %v758_v2 = vadd.f32 %v969_v40, %v707_v60  ;;  %v699_v3 = vadd.f32 %v698_v23, %v553_v13  ;;  %v754_v13 = vadd.f32 %v969_v40, %v691_v7 }
 0x1b8   :  { %v1131_v25 = vpop.f32.mrf.mxu0 }
 0x1b9   :  { %v710_v57 = vadd.f32 %v1131_v25, %v1099_v14  ;;  %v756_v12 = vadd.f32 %v969_v40, %v699_v3  ;;  %v755_v14 = vadd.f32 %v969_v40, %v694_v4 }
 0x1ba   :  { %v701_v26 = vpop.f32.mrf.mxu0 }
 0x1bb   :  { %v759_v62 = vadd.f32 %v969_v40, %v710_v57  ;;  %v702_v63 = vadd.f32 %v701_v26, %v556_v15  ;;  %v686_v15 = vadd.f32 %v1441_v20, %v1435_v11  ;;  %v770_v10 = vpack.c.bf16 %v755_v14, %v754_v13  ;;  %v768_v11 = vld [vmem:[%s1476_s6] sm:$0xf] }
 0x1bc   :  { %v1134_v28 = vpop.f32.mrf.mxu0 }
 0x1bd   :  { %v723_v50 = vadd.f32 %v1134_v28, %v1102_v18  ;;  %v772_v5 = vpack.c.bf16 %v759_v62, %v758_v2  ;;  %v757_v6 = vadd.f32 %v969_v40, %v702_v63  ;;  %v753_v19 = vadd.f32 %v969_v40, %v686_v15 }
 0x1be   :  { %v714_v30 = vpop.f32.mrf.mxu0 }
 0x1bf   :  { %v762_v55 = vadd.f32 %v969_v40, %v723_v50  ;;  %v715_v56 = vadd.f32 %v714_v30, %v569_v21  ;;  %v771_v18 = vpack.c.bf16 %v757_v6, %v756_v12  ;;  %v683_v21 = vadd.f32 %v1439_v17, %v1431_v9  ;;  %v1229_v9 = vld [vmem:[%s1474_s7] sm:$0xff]  }
 0x1c0   :  { %v1135_v31 = vpop.f32.mrf.mxu0  ;;  %1175 = vmatpush3.bf16.msra.mxu0 %v1229_v9 }
 0x1c1   :  { %v726_v47 = vadd.f32 %v1135_v31, %v1103_v24  ;;  %v760_v61 = vadd.f32 %v969_v40, %v715_v56  ;;  %v752_v22 = vadd.f32 %v969_v40, %v683_v21 }
 0x1c2   :  { %v717_v33 = vpop.f32.mrf.mxu0 }
 0x1c3   :  { %v763_v52 = vadd.f32 %v969_v40, %v726_v47  ;;  %v718_v53 = vadd.f32 %v717_v33, %v572_v27  ;;  %v769_v8 = vpack.c.bf16 %v753_v19, %v752_v22 }
 0x1c4   :  { %v1138_v34 = vpop.f32.mrf.mxu0 }
 0x1c5   :  { %v739_v37 = vadd.f32 %v1138_v34, %v1106_v29  ;;  %v774_v58 = vpack.c.bf16 %v763_v52, %v762_v55  ;;  %v761_v59 = vadd.f32 %v969_v40, %v718_v53 }
 0x1c6   :  { %v730_v36 = vpop.f32.mrf.mxu0 }
 0x1c7   :  { %v766_v43 = vadd.f32 %v969_v40, %v739_v37  ;;  %v731_v44 = vadd.f32 %v730_v36, %v585_v32  ;;  %v773_v1 = vpack.c.bf16 %v761_v59, %v760_v61 }
 0x1c8   :  { %v1139_v38 = vpop.f32.mrf.mxu0 }
 0x1c9   :  { %v742_v39 = vadd.f32 %v1139_v38, %v1107_v35  ;;  %v764_v51 = vadd.f32 %v969_v40, %v731_v44 }
 0x1ca   :  { %v733_v42 = vpop.f32.mrf.mxu0 }
 0x1cb   :  { %v767_v45 = vadd.f32 %v969_v40, %v742_v39  ;;  %v734_v46 = vadd.f32 %v733_v42, %v588_v41 }
 0x1cd   :  { %v776_v48 = vpack.c.bf16 %v767_v45, %v766_v43  ;;  %v765_v49 = vadd.f32 %v969_v40, %v734_v46 }
 0x1cf   :  { %1141 = vmatpush3.bf16.msra.mxu1 %v776_v48  ;;  %v775_v54 = vpack.c.bf16 %v765_v49, %v764_v51 }
 0x1d0   :  { %1142 = vmatprep.subr.bf16.mxu1 %v1230_v0 }
 0x1d3   :  { %1143 = vmatpush3.bf16.msra.mxu1 %v775_v54 }
 0x1d4   :  { %1144 = vmatprep.subr.bf16.mxu1 %v1230_v0 }
 0x1d7   :  { %1145 = vmatpush3.bf16.msra.mxu1 %v774_v58 }
 0x1d8   :  { %1146 = vmatprep.subr.bf16.mxu1 %v1230_v0 }
 0x1db   :  { %1147 = vmatpush3.bf16.msra.mxu1 %v773_v1 }
 0x1dc   :  { %1148 = vmatprep.subr.bf16.mxu1 %v1230_v0 }
 0x1df   :  { %1149 = vmatpush3.bf16.msra.mxu1 %v772_v5 }
 0x1e0   :  { %1150 = vmatprep.subr.bf16.mxu1 %v1230_v0 }
 0x1e3   :  { %1151 = vmatpush3.bf16.msra.mxu1 %v771_v18 }
 0x1e4   :  { %1152 = vmatprep.subr.bf16.mxu1 %v1230_v0 }
 0x1e7   :  { %1153 = vmatpush3.bf16.msra.mxu1 %v770_v10 }
 0x1e8   :  { %1154 = vmatprep.subr.bf16.mxu1 %v1230_v0 }
 0x1eb   :  { %1155 = vmatpush3.bf16.msra.mxu1 %v769_v8 }
 0x1ee   :  { %1157 = vmatmul.mubr.bf16.vlgmr.msra.gmra.mxu1 %v768_v11 }
 0x2ae   :  { %v811_v16 = vpop.f32.mrf.mxu1 }
 0x2af   :  { %v817_v17 = vpack.c.bf16 %v811_v16, %v811_v16 }
 0x2b0   :  { %v1158_v20 = vpop.f32.mrf.mxu1 }
 0x2b1   :  { %1177 = vmatmul.mubr.bf16.vlgmr.msra.gmra.mxu0 %v817_v17 }
 0x2b2   :  { %v814_v23 = vpop.f32.mrf.mxu1 }
 0x2b4   :  { %v1159_v24 = vpop.f32.mrf.mxu1 }
 0x371   :  { %v916_v25 = vpop.f32.mrf.mxu0 }
 0x372   :  { %922 = vst [vmem:[%s1477_s8] sm:$0xff] %v916_v25 }
 0x373   :  { %v1178_v0 = vpop.f32.mrf.mxu0 }
 0x375   :  { %v919_v26 = vpop.f32.mrf.mxu0 }
 0x377   :  { %v1179_v27 = vpop.f32.mrf.mxu0 }

</bundles_post_ra>
